<compile_context>
chip_gen: v7x
topology: tpu7x:2x2x1
jax: 0.10.0
libtpu: 0.0.40
codegen_flags: <defaults>
</compile_context>

<pallas_src>
import functools

import jax
import jax.numpy as jnp
from jax.experimental import pallas as pl
from jax.experimental.pallas import tpu as pltpu


def _sigmoid(x):
    # Exact sigmoid via a single EUP tanh per element (vs exp + reciprocal):
    # halves the transcendental traffic and removes the approx-recip error.
    return 0.5 * (jnp.tanh(0.5 * x) + 1.0)


def _distance_mlp_kernel(xt_ref, w1_ref, b1_ref, w2_ref, b2_ref, o_ref, *, cdtype):
    # xt_ref : (2, TN)   points, feature-major (N on the lane axis), f32
    # w1_ref : (20, 2)   layer1 weight (resident across grid steps), f32
    # b1_ref : (20, 1)   f32
    # w2_ref : (20, 1)   layer2 weight transposed to a column, f32
    # b2_ref : (1, 1)    f32
    # o_ref  : (1, TN)   lane-dense f32 output tile
    x0 = xt_ref[0:1, :].astype(cdtype)          # (1, TN)
    x1 = xt_ref[1:2, :].astype(cdtype)          # (1, TN)
    w1 = w1_ref[...].astype(cdtype)             # (20, 2)
    b1 = b1_ref[...].astype(cdtype)             # (20, 1)
    w2 = w2_ref[...].astype(cdtype)             # (20, 1)

    # Layer 1: K=2 contraction as two VPU broadcast-FMAs (MXU would be ~idle).
    z1 = w1[:, 0:1] * x0 + w1[:, 1:2] * x1 + b1            # (20, TN), cdtype
    h = _sigmoid(z1)                                        # 20 tanh/point on the EUP

    # Layer 2: elementwise mul, f32 accumulate via 20-row sublane reduce (XLU).
    hw = (w2 * h).astype(jnp.float32)                       # (20, TN) f32
    z2 = jnp.sum(hw, axis=0, keepdims=True) + b2_ref[...]   # (1, TN) f32
    o_ref[...] = _sigmoid(z2).astype(o_ref.dtype)


def _round_up(v, m):
    return ((v + m - 1) // m) * m


def _default_compute_dtype():
    kind = jax.devices()[0].device_kind.lower()
    # v5e (and older) has no native bf16 VPU/EUP -> bf16 math would just add
    # convert work there; v6e/v7x get ~2x EUP throughput from bf16.
    if any(tag in kind for tag in ("v2", "v3", "v4", "v5")):
        return "float32"
    return "bfloat16"


def _dimension_semantics(num_blocks):
    kind = jax.devices()[0].device_kind.lower()
    if num_blocks > 1 and ("v7" in kind or "7x" in kind):
        # v7x has 2 TensorCores/chip; CORE_PARALLEL actually shards the
        # lane-tile axis across both cores (plain "parallel" does not).
        return (pltpu.CORE_PARALLEL,)
    return ("parallel",)


@functools.partial(jax.jit, static_argnames=("tile_n", "compute_dtype"))
def distance_forward_t(xt, w1, b1, w2, b2, *, tile_n=32768, compute_dtype=None):
    """Feature-major entry point.  xt: (2, N) f32 points -> (N, 1) f32."""
    N = xt.shape[1]
    xt = xt.astype(jnp.float32)

    if compute_dtype is None:
        compute_dtype = _default_compute_dtype()
    cdtype = jnp.dtype(compute_dtype)

    # Lane-aligned tile: one grid step for small N, large tiles for big N so the
    # ~0.35 us per-grid-step overhead is amortized.
    n_pad = _round_up(max(N, 1), 128)
    tn = max(128, min(_round_up(tile_n, 128), n_pad))
    n_total = _round_up(n_pad, tn)
    if n_total != N:  # only pads when N is not already tile-aligned
        xt = jnp.pad(xt, ((0, 0), (0, n_total - N)))
    num_blocks = n_total // tn

    # VMEM budget: the (2,tn)/(1,tn) f32 blocks are 8-sublane padded (32*tn B
    # each) and double-buffered, plus a few (20,tn) compute-dtype temporaries.
    est = 4 * (8 * tn * 4) + 4 * (20 * tn * cdtype.itemsize)
    vmem_limit = int(min(max(est + (8 << 20), 32 << 20), 56 << 20))

    kernel = functools.partial(_distance_mlp_kernel, cdtype=cdtype)

    yt = pl.pallas_call(
        kernel,
        out_shape=jax.ShapeDtypeStruct((1, n_total), jnp.float32),
        grid_spec=pltpu.PrefetchScalarGridSpec(
            num_scalar_prefetch=0,
            grid=(num_blocks,),
            in_specs=[
                pl.BlockSpec((2, tn), lambda i: (0, i)),   # x tile (feature-major)
                pl.BlockSpec((20, 2), lambda i: (0, 0)),   # W1 (kept resident)
                pl.BlockSpec((20, 1), lambda i: (0, 0)),   # b1
                pl.BlockSpec((20, 1), lambda i: (0, 0)),   # W2^T
                pl.BlockSpec((1, 1), lambda i: (0, 0)),    # b2
            ],
            out_specs=pl.BlockSpec((1, tn), lambda i: (0, i)),
        ),
        compiler_params=pltpu.CompilerParams(
            dimension_semantics=_dimension_semantics(num_blocks),
            vmem_limit_bytes=vmem_limit,
        ),
    )(xt, w1, b1, w2, b2)

    # Padded tail lanes hold garbage sigmoid(b) values; slice them off here.
    return yt[:, :N].T  # (N, 1); transpose of a (1, N) slab is a free reshape


def distance_forward(x, w1, b1, w2, b2, *, tile_n=32768, compute_dtype=None):
    """PyTorch-layout entry point (x: (N, 2)).  Prefer distance_forward_t with a
    (2, N) feature-major input to avoid the extra HBM round trip of x.T."""
    return distance_forward_t(x.T, w1, b1, w2, b2,
                              tile_n=tile_n, compute_dtype=compute_dtype)


def init_params(key):
    # Deterministic synthetic init mirroring torch.nn.Linear's default
    # U(-1/sqrt(fan_in), +1/sqrt(fan_in)) for weights and biases.
    k1, k2, k3, k4 = jax.random.split(key, 4)
    bound1 = 1.0 / jnp.sqrt(2.0)   # layer1 fan_in = 2
    bound2 = 1.0 / jnp.sqrt(20.0)  # layer2 fan_in = 20
    w1 = jax.random.uniform(k1, (20, 2), jnp.float32, -bound1, bound1)   # (out, in)
    b1 = jax.random.uniform(k2, (20, 1), jnp.float32, -bound1, bound1)
    w2 = jax.random.uniform(k3, (20, 1), jnp.float32, -bound2, bound2)   # layer2 W^T
    b2 = jax.random.uniform(k4, (1, 1), jnp.float32, -bound2, bound2)
    return w1, b1, w2, b2


def reference_forward(x, w1, b1, w2, b2):
    h = jax.nn.sigmoid(x @ w1.T + b1.T)      # (N, 20)
    return jax.nn.sigmoid(h @ w2 + b2)       # (N, 1)


if __name__ == "__main__":
    key = jax.random.PRNGKey(0)
    kx, kp = jax.random.split(key)

    # Points like Domain.Construct_points would produce (boundary curves
    # f2 = -1, f1 = +1), generated directly in the feature-major (2, N)
    # layout the kernel consumes (no wrapper transpose / pad round trip).
    N = 1024
    Ix0, Ix1 = -1.0, 1.0
    xr = jax.random.uniform(kx, (2, N), jnp.float32)
    xcoord = Ix0 + (Ix1 - Ix0) * xr[0:1, :]
    ycoord = -1.0 + (1.0 - (-1.0)) * xr[1:2, :]
    xt = jnp.concatenate([xcoord, ycoord], axis=0)          # (2, N)

    w1, b1, w2, b2 = init_params(kp)

    y = distance_forward_t(xt, w1, b1, w2, b2)
    jax.block_until_ready(y)

    y_ref = reference_forward(xt.T, w1, b1, w2, b2)
    assert y.shape == (N, 1)
    # tanh-form sigmoid is exact; residual error is only the optional bf16
    # hidden path on v6e/v7x, comfortably inside 1e-2.
    err = float(jnp.max(jnp.abs(y - y_ref)))
    assert err < 1e-2, f"mismatch vs reference: {err}"

    print("KERNEL_OK")
</pallas_src>

<mosaic_0001>
module attributes {stable_mosaic.version = 11 : i64} {
  func.func @_distance_mlp_kernel(%arg0: i32, %arg1: memref<2x1024xf32, #tpu.memory_space<vmem>>, %arg2: memref<20x2xf32, #tpu.memory_space<vmem>>, %arg3: memref<20x1xf32, #tpu.memory_space<vmem>>, %arg4: memref<20x1xf32, #tpu.memory_space<vmem>>, %arg5: memref<1x1xf32, #tpu.memory_space<vmem>>, %arg6: memref<1x1024xf32, #tpu.memory_space<vmem>>) attributes {dimension_semantics = [#tpu.dimension_semantics<parallel>], iteration_bounds = array<i64: 1>, scalar_prefetch = 0 : i64, scratch_operands = 0 : i64, tpu.core_type = #tpu.core_type<tc>, window_params = [{transform_indices = @transform_0, window_bounds = array<i64: 2, 1024>}, {pipeline_mode = #tpu.pipeline_mode<synchronous>, transform_indices = @transform_1, window_bounds = array<i64: 20, 2>}, {pipeline_mode = #tpu.pipeline_mode<synchronous>, transform_indices = @transform_2, window_bounds = array<i64: 20, 1>}, {pipeline_mode = #tpu.pipeline_mode<synchronous>, transform_indices = @transform_3, window_bounds = array<i64: 20, 1>}, {pipeline_mode = #tpu.pipeline_mode<synchronous>, transform_indices = @transform_4, window_bounds = array<i64: 1, 1>}, {transform_indices = @transform_5, window_bounds = array<i64: 1, 1024>}]} {
    %c0 = arith.constant 0 : index
    %c0_0 = arith.constant 0 : index
    %0 = vector.load %arg1[%c0, %c0_0] : memref<2x1024xf32, #tpu.memory_space<vmem>>, vector<1x1024xf32>
    %1 = arith.truncf %0 : vector<1x1024xf32> to vector<1x1024xbf16>
    %c1 = arith.constant 1 : index
    %c0_1 = arith.constant 0 : index
    %2 = vector.load %arg1[%c1, %c0_1] : memref<2x1024xf32, #tpu.memory_space<vmem>>, vector<1x1024xf32>
    %3 = arith.truncf %2 : vector<1x1024xf32> to vector<1x1024xbf16>
    %c0_2 = arith.constant 0 : index
    %c0_3 = arith.constant 0 : index
    %4 = vector.load %arg2[%c0_2, %c0_3] : memref<20x2xf32, #tpu.memory_space<vmem>>, vector<20x2xf32>
    %5 = arith.truncf %4 : vector<20x2xf32> to vector<20x2xbf16>
    %c0_4 = arith.constant 0 : index
    %c0_5 = arith.constant 0 : index
    %6 = vector.load %arg3[%c0_4, %c0_5] : memref<20x1xf32, #tpu.memory_space<vmem>>, vector<20x1xf32>
    %7 = arith.truncf %6 : vector<20x1xf32> to vector<20x1xbf16>
    %c0_6 = arith.constant 0 : index
    %c0_7 = arith.constant 0 : index
    %8 = vector.load %arg4[%c0_6, %c0_7] : memref<20x1xf32, #tpu.memory_space<vmem>>, vector<20x1xf32>
    %9 = arith.truncf %8 : vector<20x1xf32> to vector<20x1xbf16>
    %10 = vector.extract_strided_slice %5 {offsets = [0, 0], sizes = [20, 1], strides = [1, 1]} : vector<20x2xbf16> to vector<20x1xbf16>
    %11 = vector.broadcast %10 : vector<20x1xbf16> to vector<20x1024xbf16>
    %12 = vector.broadcast %1 : vector<1x1024xbf16> to vector<20x1024xbf16>
    %13 = arith.mulf %11, %12 : vector<20x1024xbf16>
    %14 = vector.extract_strided_slice %5 {offsets = [0, 1], sizes = [20, 1], strides = [1, 1]} : vector<20x2xbf16> to vector<20x1xbf16>
    %15 = vector.broadcast %14 : vector<20x1xbf16> to vector<20x1024xbf16>
    %16 = vector.broadcast %3 : vector<1x1024xbf16> to vector<20x1024xbf16>
    %17 = arith.mulf %15, %16 : vector<20x1024xbf16>
    %18 = arith.addf %13, %17 : vector<20x1024xbf16>
    %19 = vector.broadcast %7 : vector<20x1xbf16> to vector<20x1024xbf16>
    %20 = arith.addf %18, %19 : vector<20x1024xbf16>
    %cst = arith.constant 5.000000e-01 : bf16
    %21 = vector.broadcast %cst : bf16 to vector<20x1024xbf16>
    %22 = arith.mulf %21, %20 : vector<20x1024xbf16>
    %23 = math.tanh %22 : vector<20x1024xbf16>
    %cst_8 = arith.constant 1.000000e+00 : bf16
    %24 = vector.broadcast %cst_8 : bf16 to vector<20x1024xbf16>
    %25 = arith.addf %23, %24 : vector<20x1024xbf16>
    %cst_9 = arith.constant 5.000000e-01 : bf16
    %26 = vector.broadcast %cst_9 : bf16 to vector<20x1024xbf16>
    %27 = arith.mulf %26, %25 : vector<20x1024xbf16>
    %28 = vector.broadcast %9 : vector<20x1xbf16> to vector<20x1024xbf16>
    %29 = arith.mulf %28, %27 : vector<20x1024xbf16>
    %30 = arith.extf %29 : vector<20x1024xbf16> to vector<20x1024xf32>
    %cst_10 = arith.constant dense<0.000000e+00> : vector<1024xf32>
    %31 = vector.multi_reduction <add>, %30, %cst_10 [0] : vector<20x1024xf32> to vector<1024xf32>
    %32 = vector.shape_cast %31 : vector<1024xf32> to vector<1x1024xf32>
    %c0_11 = arith.constant 0 : index
    %c0_12 = arith.constant 0 : index
    %33 = vector.load %arg5[%c0_11, %c0_12] : memref<1x1xf32, #tpu.memory_space<vmem>>, vector<1x1xf32>
    %34 = vector.broadcast %33 : vector<1x1xf32> to vector<1x1024xf32>
    %35 = arith.addf %32, %34 : vector<1x1024xf32>
    %cst_13 = arith.constant 5.000000e-01 : f32
    %36 = vector.broadcast %cst_13 : f32 to vector<1x1024xf32>
    %37 = arith.mulf %36, %35 : vector<1x1024xf32>
    %38 = math.tanh %37 : vector<1x1024xf32>
    %cst_14 = arith.constant 1.000000e+00 : f32
    %39 = vector.broadcast %cst_14 : f32 to vector<1x1024xf32>
    %40 = arith.addf %38, %39 : vector<1x1024xf32>
    %cst_15 = arith.constant 5.000000e-01 : f32
    %41 = vector.broadcast %cst_15 : f32 to vector<1x1024xf32>
    %42 = arith.mulf %41, %40 : vector<1x1024xf32>
    %c0_16 = arith.constant 0 : index
    %c0_17 = arith.constant 0 : index
    %43 = vector.load %arg6[%c0_16, %c0_17] : memref<1x1024xf32, #tpu.memory_space<vmem>>, vector<1x1024xf32>
    tpu.vector_store %arg6[%c0_16, %c0_17], %42 {strides = array<i32>} : memref<1x1024xf32, #tpu.memory_space<vmem>>, vector<1x1024xf32>,
    return
  }
  func.func @transform_0(%arg0: i32) -> (i32, i32) {
    %c0_i32 = arith.constant 0 : i32
    %c0_i32_0 = arith.constant 0 : i32
    return %c0_i32, %arg0 : i32, i32
  }
  func.func @transform_1(%arg0: i32) -> (i32, i32) {
    %c0_i32 = arith.constant 0 : i32
    %c0_i32_0 = arith.constant 0 : i32
    %c0_i32_1 = arith.constant 0 : i32
    return %c0_i32, %c0_i32_0 : i32, i32
  }
  func.func @transform_2(%arg0: i32) -> (i32, i32) {
    %c0_i32 = arith.constant 0 : i32
    %c0_i32_0 = arith.constant 0 : i32
    %c0_i32_1 = arith.constant 0 : i32
    return %c0_i32, %c0_i32_0 : i32, i32
  }
  func.func @transform_3(%arg0: i32) -> (i32, i32) {
    %c0_i32 = arith.constant 0 : i32
    %c0_i32_0 = arith.constant 0 : i32
    %c0_i32_1 = arith.constant 0 : i32
    return %c0_i32, %c0_i32_0 : i32, i32
  }
  func.func @transform_4(%arg0: i32) -> (i32, i32) {
    %c0_i32 = arith.constant 0 : i32
    %c0_i32_0 = arith.constant 0 : i32
    %c0_i32_1 = arith.constant 0 : i32
    return %c0_i32, %c0_i32_0 : i32, i32
  }
  func.func @transform_5(%arg0: i32) -> (i32, i32) {
    %c0_i32 = arith.constant 0 : i32
    %c0_i32_0 = arith.constant 0 : i32
    return %c0_i32, %arg0 : i32, i32
  }
}

</mosaic_0001>

<bundles_post_ra>
// kernel: distance_forward_t.1
= control target key start
LH: loop header
LB: loop body
LE: loop exit
PB: predicated region body
PF: predicated region fallthrough
CT: control target
= control target key end

     0   :  { %s974_s0 = inlined_call_operand.vmem [shape: f32[2,1024], index: 0, kind: input, shape index: {}]   ;;  %s975_s1 = inlined_call_operand.vmem [shape: f32[20,2], index: 1, kind: input, shape index: {}]   ;;  %s976_s2 = inlined_call_operand.vmem [shape: f32[20,1], index: 2, kind: input, shape index: {}]   ;;  %s977_s3 = inlined_call_operand.vmem [shape: f32[20,1], index: 3, kind: input, shape index: {}]   ;;  %s978_s4 = inlined_call_operand.<no memory space> [shape: f32[1,1], index: 4, kind: input, shape index: {}]   ;;  %s979_s5 = inlined_call_operand.hbm [shape: f32[1,1024], index: 5, kind: output, shape index: {}]  }
   0x1   :  { %v10_v0 = vstv %s978_s4 }
   0x2   :  { %11 = vst [vmem:[#allocation2] sm:$0x1] %v10_v0 }
   0x3   :  { %v128_v1 = vld [vmem:[%s975_s1 + $0x10] sm:$0xf]  ;;  %v126_v2 = vld [vmem:[%s975_s1] sm:$0xff]  ;;  %v127_v3 = vld [vmem:[%s975_s1 + $0x8] sm:$0xff]  ;;  %v738_v4 = vmov 0  }
   0x4   :  { %662 = vset.pattern.permute.xlu1 %v738_v4  ;;  %660 = vset.pattern.permute.xlu0 %v738_v4  ;;  %v130_v5 = vpack.c.bf16 %v128_v1, %v128_v1  ;;  %v129_v6 = vpack.c.bf16 %v127_v3, %v126_v2 }
   0x6   :  { %148 = vperm.xlu1 %662, %v130_v5   ;;  %143 = vperm.xlu0 %660, %v129_v6  }
   0x7   :  { %12 = vsyncpa [#allocation4], 0  ;;  %v131_v7 = vld [vmem:[%s976_s2] sm:$0xff]  ;;  %v132_v8 = vld [vmem:[%s976_s2 + $0x8] sm:$0xff]  ;;  %v739_v10 = vmov 1   ;;  %v27_v19 = vlaneseq  ;;  %vm460_vm0 = vcmask 1043456  }
   0x8   :  { %v133_v9 = vld [vmem:[%s976_s2 + $0x10] sm:$0xf]  ;;  %v134_v11 = vpack.c.bf16 %v132_v8, %v131_v7  ;;  %v136_v13 = vld [vmem:[%s977_s3] sm:$0xff]  ;;  %v137_v14 = vld [vmem:[%s977_s3 + $0x8] sm:$0xff] }
   0x9   :  { %v135_v12 = vpack.c.bf16 %v133_v9, %v133_v9  ;;  %v139_v15 = vpack.c.bf16 %v137_v14, %v136_v13  ;;  %v532_v16 = vld [vmem:[#allocation2] sm:$0x1]  ;;  %v138_v17 = vld [vmem:[%s977_s3 + $0x10] sm:$0xf]  ;;  %v802_v20 = vshrl.u32 %v27_v19, 7 }
   0xa   :  { %663 = vset.pattern.permute.xlu1 %v739_v10  ;;  %661 = vset.pattern.permute.xlu0 %v739_v10  ;;  %v140_v18 = vpack.c.bf16 %v138_v17, %v138_v17  ;;  %v25_v25 = vld [vmem:[%s974_s0] ss:$2 sm:$0xff]  ;;  %v655_v30 = vld [vmem:[%s974_s0 + $0x1] ss:$2 sm:$0xff]  ;;  %s741_s0 = smov [#allocation3]  }
   0xb   :  { %228 = vperm.xlu1 %663, %v130_v5   ;;  %224 = vperm.xlu0 %661, %v129_v6   ;;  %v805_v21 = vsub.s32 0, %v802_v20  ;;  %v33_v22 = vsub.s32 1, %v802_v20  ;;  %v37_v23 = vsub.s32 2, %v802_v20  ;;  %v41_v24 = vsub.s32 3, %v802_v20  ;;  %s647_s13 = sshll.u32 %s741_s0, 4  ;;  %s648_s13 = int_to_ptr.vmem [resolvable:$true] %s647_s13 }
   0xc   :  { %v45_v26 = vsub.s32 4, %v802_v20  ;;  %v49_v27 = vsub.s32 5, %v802_v20  ;;  %v53_v28 = vsub.s32 6, %v802_v20  ;;  %v57_v29 = vsub.s32 7, %v802_v20  ;;  %s714_s14 = scalar_lea.vmem %s648_s13, 128  ;;  %p719_p1 = scmp.lt.s32.totalorder %s648_s13, %s648_s13 }
   0xd   :  { %v30_v31 = vrot.slane %v25_v25, %v805_v21  ;;  %v34_v32 = vrot.slane %v25_v25, %v33_v22  ;;  %v38_v33 = vrot.slane %v25_v25, %v37_v23  ;;  %v42_v34 = vrot.slane %v25_v25, %v41_v24  ;;  %p715_p0 = scmp.ne.s32.totalorder %s648_s13, %s714_s14  ;;  %p720_p2 = scmp.lt.s32.totalorder %s714_s14, %s714_s14 }
   0xe   :  { %v46_v35 = vrot.slane %v25_v25, %v45_v26  ;;  %v50_v36 = vrot.slane %v25_v25, %v49_v27  ;;  %v54_v37 = vrot.slane %v25_v25, %v53_v28  ;;  %v58_v38 = vrot.slane %v25_v25, %v57_v29 }
   0xf   :  { %664 = vset.pattern.permute.xlu1 %v738_v4  ;;  %665 = vset.pattern.permute.xlu0 %v738_v4  ;;  %v81_v39 = vrot.slane %v655_v30, %v805_v21  ;;  %v85_v40 = vrot.slane %v655_v30, %v33_v22  ;;  %v89_v41 = vrot.slane %v655_v30, %v37_v23  ;;  %p721_p3 = por %p720_p2, %p719_p1 }
  0x10   :  { %321 = vperm.xlu1 %664, %v134_v11   ;;  %326 = vperm.xlu0 %665, %v135_v12   ;;  %v93_v42 = vrot.slane %v655_v30, %v41_v24  ;;  %v97_v43 = vrot.slane %v655_v30, %v45_v26  ;;  %v101_v44 = vrot.slane %v655_v30, %v49_v27 }
  0x11   :  { %v105_v45 = vrot.slane %v655_v30, %v53_v28  ;;  %v109_v46 = vrot.slane %v655_v30, %v57_v29  ;;  %v67_v47 = vpack.c.bf16 %v30_v31, %v30_v31  ;;  %v68_v48 = vpack.c.bf16 %v34_v32, %v34_v32  ;;  %p722_p4 = pnand %p721_p3, %p715_p0 }
  0x12   :  { %v69_v49 = vpack.c.bf16 %v38_v33, %v38_v33  ;;  %v70_v50 = vpack.c.bf16 %v42_v34, %v42_v34  ;;  %v71_v51 = vpack.c.bf16 %v46_v35, %v46_v35  ;;  %v72_v52 = vpack.c.bf16 %v50_v36, %v50_v36 }
  0x13   :  { %v73_v53 = vpack.c.bf16 %v54_v37, %v54_v37  ;;  %v74_v54 = vpack.c.bf16 %v58_v38, %v58_v38  ;;  %v118_v55 = vpack.c.bf16 %v81_v39, %v81_v39  ;;  %v119_v56 = vpack.c.bf16 %v85_v40, %v85_v40 }
  0x14   :  { %411 = vperm.xlu1 %664, %v139_v15   ;;  %535 = vperm.xlu0 %665, %v532_v16   ;;  %v120_v57 = vpack.c.bf16 %v89_v41, %v89_v41  ;;  %v121_v58 = vpack.c.bf16 %v93_v42, %v93_v42  ;;  %v122_v59 = vpack.c.bf16 %v97_v43, %v97_v43 }
  0x15   :  { %v123_v60 = vpack.c.bf16 %v101_v44, %v101_v44  ;;  %v124_v61 = vpack.c.bf16 %v105_v45, %v105_v45  ;;  %v125_v62 = vpack.c.bf16 %v109_v46, %v109_v46  ;;  %v152_v63 = vpack.i.b16 %v67_v47, %v67_v47 }
  0x16   :  { %v159_v0 = vpack.i.b16 %v68_v48, %v68_v48  ;;  %v166_v1 = vpack.i.b16 %v69_v49, %v69_v49  ;;  %v173_v2 = vpack.i.b16 %v70_v50, %v70_v50  ;;  %v180_v3 = vpack.i.b16 %v71_v51, %v71_v51 }
  0x17   :  { %v187_v4 = vpack.i.b16 %v72_v52, %v72_v52  ;;  %v194_v5 = vpack.i.b16 %v73_v53, %v73_v53  ;;  %v201_v6 = vpack.i.b16 %v74_v54, %v74_v54  ;;  %v232_v7 = vpack.i.b16 %v118_v55, %v118_v55 }
  0x18   :  { %416 = vperm.xlu1 %664, %v140_v18   ;;  %v239_v8 = vpack.i.b16 %v119_v56, %v119_v56  ;;  %v246_v9 = vpack.i.b16 %v120_v57, %v120_v57  ;;  %v253_v10 = vpack.i.b16 %v121_v58, %v121_v58  ;;  %v260_v11 = vpack.i.b16 %v122_v59, %v122_v59 }
  0x19   :  { %v267_v12 = vpack.i.b16 %v123_v60, %v123_v60  ;;  %v274_v13 = vpack.i.b16 %v124_v61, %v124_v61  ;;  %v281_v14 = vpack.i.b16 %v125_v62, %v125_v62  ;;  %v823_v15 = vrot.slane %v152_v63, %v805_v21 }
  0x1a   :  { %v826_v16 = vrot.slane %v159_v0, %v805_v21  ;;  %v829_v17 = vrot.slane %v166_v1, %v805_v21  ;;  %v832_v18 = vrot.slane %v173_v2, %v805_v21  ;;  %v835_v19 = vrot.slane %v180_v3, %v805_v21 }
  0x1b   :  { %v838_v22 = vrot.slane %v187_v4, %v805_v21  ;;  %v841_v23 = vrot.slane %v194_v5, %v805_v21  ;;  %v844_v24 = vrot.slane %v201_v6, %v805_v21  ;;  %v849_v27 = vrot.slane %v232_v7, %v805_v21 }
  0x1c   :  { %v852_v28 = vrot.slane %v239_v8, %v805_v21  ;;  %v855_v29 = vrot.slane %v246_v9, %v805_v21  ;;  %v858_v30 = vrot.slane %v253_v10, %v805_v21  ;;  %v861_v31 = vrot.slane %v260_v11, %v805_v21 }
  0x1d   :  { %v864_v32 = vrot.slane %v267_v12, %v805_v21  ;;  %v867_v33 = vrot.slane %v274_v13, %v805_v21  ;;  %v870_v34 = vrot.slane %v281_v14, %v805_v21 }
  0x85   :  { %v846_v25 = vpop.permute.xlu1 %148  ;;  %v144_v26 = vpop.permute.xlu0 %143 }
  0x86   :  { %v215_v35 = vmul.bf16 %v823_v15, %v846_v25  ;;  %v216_v36 = vmul.bf16 %v826_v16, %v846_v25  ;;  %v217_v37 = vmul.bf16 %v829_v17, %v846_v25  ;;  %v218_v38 = vmul.bf16 %v832_v18, %v846_v25 }
  0x87   :  { %v219_v39 = vmul.bf16 %v835_v19, %v846_v25  ;;  %v220_v40 = vmul.bf16 %v838_v22, %v846_v25  ;;  %v221_v41 = vmul.bf16 %v841_v23, %v846_v25  ;;  %v222_v42 = vmul.bf16 %v844_v24, %v846_v25 }
  0x88   :  { %v207_v43 = vmul.bf16 %v823_v15, %v144_v26  ;;  %v208_v44 = vmul.bf16 %v826_v16, %v144_v26  ;;  %v209_v45 = vmul.bf16 %v829_v17, %v144_v26  ;;  %v210_v46 = vmul.bf16 %v832_v18, %v144_v26 }
  0x89   :  { %v211_v47 = vmul.bf16 %v835_v19, %v144_v26  ;;  %v212_v48 = vmul.bf16 %v838_v22, %v144_v26  ;;  %v213_v49 = vmul.bf16 %v841_v23, %v144_v26  ;;  %v214_v50 = vmul.bf16 %v844_v24, %v144_v26 }
  0x8a   :  { %v229_v51 = vpop.permute.xlu1 %228  ;;  %v225_v52 = vpop.permute.xlu0 %224 }
  0x8b   :  { %v295_v53 = vmul.bf16 %v849_v27, %v229_v51  ;;  %v296_v54 = vmul.bf16 %v852_v28, %v229_v51  ;;  %v297_v55 = vmul.bf16 %v855_v29, %v229_v51  ;;  %v298_v56 = vmul.bf16 %v858_v30, %v229_v51 }
  0x8c   :  { %v299_v57 = vmul.bf16 %v861_v31, %v229_v51  ;;  %v300_v58 = vmul.bf16 %v864_v32, %v229_v51  ;;  %v301_v59 = vmul.bf16 %v867_v33, %v229_v51  ;;  %v302_v60 = vmul.bf16 %v870_v34, %v229_v51 }
  0x8d   :  { %v287_v61 = vmul.bf16 %v849_v27, %v225_v52  ;;  %v288_v62 = vmul.bf16 %v852_v28, %v225_v52  ;;  %v289_v63 = vmul.bf16 %v855_v29, %v225_v52  ;;  %v290_v0 = vmul.bf16 %v858_v30, %v225_v52 }
  0x8e   :  { %v291_v1 = vmul.bf16 %v861_v31, %v225_v52  ;;  %v292_v2 = vmul.bf16 %v864_v32, %v225_v52  ;;  %v293_v3 = vmul.bf16 %v867_v33, %v225_v52  ;;  %v294_v4 = vmul.bf16 %v870_v34, %v225_v52 }
  0x8f   :  { %v322_v5 = vpop.permute.xlu1 %321  ;;  %v303_v6 = vadd.bf16 %v287_v61, %v207_v43  ;;  %v304_v7 = vadd.bf16 %v288_v62, %v208_v44  ;;  %v305_v8 = vadd.bf16 %v289_v63, %v209_v45  ;;  %v306_v9 = vadd.bf16 %v290_v0, %v210_v46  ;;  %v327_v34 = vpop.permute.xlu0 %326 }
  0x90   :  { %v307_v10 = vadd.bf16 %v291_v1, %v211_v47  ;;  %v308_v11 = vadd.bf16 %v292_v2, %v212_v48  ;;  %v309_v12 = vadd.bf16 %v293_v3, %v213_v49  ;;  %v310_v13 = vadd.bf16 %v294_v4, %v214_v50 }
  0x91   :  { %v329_v14 = vadd.bf16 %v322_v5, %v303_v6  ;;  %v330_v15 = vadd.bf16 %v322_v5, %v304_v7  ;;  %v331_v16 = vadd.bf16 %v322_v5, %v305_v8  ;;  %v332_v17 = vadd.bf16 %v322_v5, %v306_v9 }
  0x92   :  { %v333_v18 = vadd.bf16 %v322_v5, %v307_v10  ;;  %v334_v19 = vadd.bf16 %v322_v5, %v308_v11  ;;  %v335_v22 = vadd.bf16 %v322_v5, %v309_v12  ;;  %v336_v26 = vadd.bf16 %v322_v5, %v310_v13 }
  0x93   :  { %v345_v27 = vmul.bf16 1056980736, %v329_v14  ;;  %v346_v28 = vmul.bf16 1056980736, %v330_v15  ;;  %v347_v29 = vmul.bf16 1056980736, %v331_v16  ;;  %v311_v30 = vadd.bf16 %v295_v53, %v215_v35  ;;  %v536_v1 = vpop.permute.xlu0 %535  ;;  %v412_v3 = vpop.permute.xlu1 %411 }
  0x94   :  { %v348_v31 = vmul.bf16 1056980736, %v332_v17  ;;  %v349_v32 = vmul.bf16 1056980736, %v333_v18  ;;  %v350_v33 = vmul.bf16 1056980736, %v334_v19  ;;  %v312_v43 = vadd.bf16 %v296_v54, %v216_v36 }
  0x95   :  { %v351_v44 = vmul.bf16 1056980736, %v335_v22  ;;  %v352_v45 = vmul.bf16 1056980736, %v336_v26  ;;  %666 = vtanh.bf16 %v345_v27  ;;  %v313_v46 = vadd.bf16 %v297_v55, %v217_v37 }
  0x96   :  { %668 = vtanh.bf16 %v346_v28  ;;  %v314_v47 = vadd.bf16 %v298_v56, %v218_v38  ;;  %v315_v48 = vadd.bf16 %v299_v57, %v219_v39  ;;  %v316_v49 = vadd.bf16 %v300_v58, %v220_v40 }
  0x97   :  { %670 = vtanh.bf16 %v347_v29  ;;  %v317_v50 = vadd.bf16 %v301_v59, %v221_v41  ;;  %v318_v35 = vadd.bf16 %v302_v60, %v222_v42  ;;  %v337_v51 = vadd.bf16 %v327_v34, %v311_v30 }
  0x98   :  { %672 = vtanh.bf16 %v348_v31  ;;  %v338_v36 = vadd.bf16 %v327_v34, %v312_v43  ;;  %v339_v52 = vadd.bf16 %v327_v34, %v313_v46  ;;  %v340_v53 = vadd.bf16 %v327_v34, %v314_v47 }
  0x99   :  { %674 = vtanh.bf16 %v349_v32  ;;  %v341_v37 = vadd.bf16 %v327_v34, %v315_v48  ;;  %v342_v38 = vadd.bf16 %v327_v34, %v316_v49  ;;  %v353_v39 = vmul.bf16 1056980736, %v337_v51 }
  0x9a   :  { %676 = vtanh.bf16 %v350_v33  ;;  %v354_v40 = vmul.bf16 1056980736, %v338_v36  ;;  %v343_v54 = vadd.bf16 %v327_v34, %v317_v50  ;;  %v355_v55 = vmul.bf16 1056980736, %v339_v52 }
  0x9b   :  { %678 = vtanh.bf16 %v351_v44  ;;  %v344_v23 = vadd.bf16 %v327_v34, %v318_v35  ;;  %v356_v41 = vmul.bf16 1056980736, %v340_v53  ;;  %v357_v56 = vmul.bf16 1056980736, %v341_v37 }
  0x9c   :  { %680 = vtanh.bf16 %v352_v45  ;;  %v358_v24 = vmul.bf16 1056980736, %v342_v38  ;;  %v359_v25 = vmul.bf16 1056980736, %v343_v54  ;;  %v919_v14 = vrot.slane %v536_v1, %v805_v21  ;;  %v417_v1 = vpop.permute.xlu1 %416 }
  0x9d   :  { %682 = vtanh.bf16 %v353_v39  ;;  %v360_v57 = vmul.bf16 1056980736, %v344_v23 }
  0x9e   :  { %684 = vtanh.bf16 %v354_v40 }
  0x9f   :  { %686 = vtanh.bf16 %v355_v55 }
  0xa0   :  { %v667_v42 = vpop.eup %666  ;;  %688 = vtanh.bf16 %v356_v41 }
  0xa1   :  { %v669_v58 = vpop.eup %668  ;;  %690 = vtanh.bf16 %v357_v56  ;;  %v377_v59 = vadd.bf16 1065369472, %v667_v42 }
  0xa2   :  { %v671_v60 = vpop.eup %670  ;;  %692 = vtanh.bf16 %v358_v24  ;;  %v378_v61 = vadd.bf16 1065369472, %v669_v58 }
  0xa3   :  { %v673_v62 = vpop.eup %672  ;;  %694 = vtanh.bf16 %v359_v25  ;;  %v379_v63 = vadd.bf16 1065369472, %v671_v60  ;;  %v393_v0 = vmul.bf16 1056980736, %v377_v59 }
  0xa4   :  { %v675_v2 = vpop.eup %674  ;;  %696 = vtanh.bf16 %v360_v57  ;;  %v380_v4 = vadd.bf16 1065369472, %v673_v62  ;;  %v394_v5 = vmul.bf16 1056980736, %v378_v61 }
  0xa5   :  { %v677_v6 = vpop.eup %676  ;;  %v381_v7 = vadd.bf16 1065369472, %v675_v2  ;;  %v395_v8 = vmul.bf16 1056980736, %v379_v63  ;;  %v419_v9 = vmul.bf16 %v412_v3, %v393_v0 }
  0xa6   :  { %v679_v10 = vpop.eup %678  ;;  %v382_v11 = vadd.bf16 1065369472, %v677_v6  ;;  %v396_v12 = vmul.bf16 1056980736, %v380_v4  ;;  %v420_v13 = vmul.bf16 %v412_v3, %v394_v5 }
  0xa7   :  { %v681_v15 = vpop.eup %680  ;;  %v383_v16 = vadd.bf16 1065369472, %v679_v10  ;;  %v397_v17 = vmul.bf16 1056980736, %v381_v7  ;;  %v421_v18 = vmul.bf16 %v412_v3, %v395_v8  ;;  %v435_v19 = vunpack.c.l.bf16 %v419_v9 }
  0xa8   :  { %v683_v22 = vpop.eup %682  ;;  %v384_v26 = vadd.bf16 1065369472, %v681_v15  ;;  %v398_v27 = vmul.bf16 1056980736, %v382_v11  ;;  %v921_v28 = vmul.bf16 %v412_v3, %v396_v12  ;;  %v436_v29 = vunpack.c.l.bf16 %v420_v13 }
  0xa9   :  { %v685_v30 = vpop.eup %684  ;;  %v399_v31 = vmul.bf16 1056980736, %v383_v16  ;;  %v923_v32 = vmul.bf16 %v412_v3, %v397_v17  ;;  %v437_v33 = vunpack.c.l.bf16 %v421_v18  ;;  %v443_v34 = vunpack.c.h.bf16 %v419_v9 }
  0xaa   :  { %v687_v43 = vpop.eup %686  ;;  %v400_v21 = vmul.bf16 1056980736, %v384_v26  ;;  %v925_v44 = vmul.bf16 %v412_v3, %v398_v27  ;;  %v438_v45 = vunpack.c.l.bf16 %v921_v28  ;;  %v444_v46 = vunpack.c.h.bf16 %v420_v13 }
  0xab   :  { %v689_v47 = vpop.eup %688  ;;  %v928_v48 = vmul.bf16 %v412_v3, %v399_v31  ;;  %v439_v49 = vunpack.c.l.bf16 %v923_v32  ;;  %v445_v50 = vunpack.c.h.bf16 %v421_v18  ;;  %v446_v35 = vunpack.c.h.bf16 %v921_v28 }
  0xac   :  { %v691_v51 = vpop.eup %690  ;;  %v932_v36 = vmul.bf16 %v412_v3, %v400_v21  ;;  %v440_v52 = vunpack.c.l.bf16 %v925_v44  ;;  %v447_v53 = vunpack.c.h.bf16 %v923_v32  ;;  %v448_v37 = vunpack.c.h.bf16 %v925_v44 }
  0xad   :  { %v693_v38 = vpop.eup %692  ;;  %v441_v39 = vunpack.c.l.bf16 %v928_v48  ;;  %v449_v40 = vunpack.c.h.bf16 %v928_v48  ;;  %v385_v54 = vadd.bf16 1065369472, %v683_v22  ;;  %v386_v55 = vadd.bf16 1065369472, %v685_v30 }
  0xae   :  { %v695_v23 = vpop.eup %694  ;;  %v442_v41 = vunpack.c.l.bf16 %v932_v36  ;;  %v450_v56 = vunpack.c.h.bf16 %v932_v36  ;;  %v387_v24 = vadd.bf16 1065369472, %v687_v43  ;;  %v388_v25 = vadd.bf16 1065369472, %v689_v47 }
  0xaf   :  { %v697_v42 = vpop.eup %696  ;;  %v389_v57 = vadd.bf16 1065369472, %v691_v51  ;;  %v390_v58 = vadd.bf16 1065369472, %v693_v38  ;;  %v391_v59 = vadd.bf16 1065369472, %v695_v23  ;;  %v459_v60 = vadd.f32 %v443_v34, %v435_v19 }
  0xb0   :  { %v392_v61 = vadd.bf16 1065369472, %v697_v42  ;;  %v401_v62 = vmul.bf16 1056980736, %v385_v54  ;;  %v402_v63 = vmul.bf16 1056980736, %v386_v55  ;;  %v469_v0 = vadd.f32 %v444_v46, %v436_v29 }
  0xb1   :  { %v403_v2 = vmul.bf16 1056980736, %v387_v24  ;;  %v404_v3 = vmul.bf16 1056980736, %v388_v25  ;;  %v405_v4 = vmul.bf16 1056980736, %v389_v57  ;;  %v478_v5 = vadd.f32 %v445_v50, %v437_v33 }
  0xb2   :  { %v406_v6 = vmul.bf16 1056980736, %v390_v58  ;;  %v407_v7 = vmul.bf16 1056980736, %v391_v59  ;;  %v408_v8 = vmul.bf16 1056980736, %v392_v61  ;;  %v427_v9 = vmul.bf16 %v417_v1, %v401_v62 }
  0xb3   :  { %v428_v10 = vmul.bf16 %v417_v1, %v402_v63  ;;  %v429_v11 = vmul.bf16 %v417_v1, %v403_v2  ;;  %v430_v12 = vmul.bf16 %v417_v1, %v404_v3  ;;  %v431_v13 = vmul.bf16 %v417_v1, %v405_v4 }
  0xb4   :  { %v432_v15 = vmul.bf16 %v417_v1, %v406_v6  ;;  %v433_v16 = vmul.bf16 %v417_v1, %v407_v7  ;;  %v434_v17 = vmul.bf16 %v417_v1, %v408_v8  ;;  %v451_v18 = vunpack.c.l.bf16 %v427_v9 }
  0xb5   :  { %v452_v19 = vunpack.c.l.bf16 %v428_v10  ;;  %v453_v22 = vunpack.c.l.bf16 %v429_v11  ;;  %v454_v26 = vunpack.c.l.bf16 %v430_v12  ;;  %v455_v27 = vunpack.c.l.bf16 %v431_v13 }
  0xb6   :  { %v456_v28 = vunpack.c.l.bf16 %v432_v15  ;;  %v457_v29 = vunpack.c.l.bf16 %v433_v16  ;;  %v458_v30 = vunpack.c.l.bf16 %v434_v17  ;;  %v461_v31 = vsel %vm460_vm0, %v451_v18, 0.0 }
  0xb7   :  { %v462_v32 = vadd.f32 %v461_v31, %v459_v60  ;;  %v470_v33 = vsel %vm460_vm0, %v452_v19, 0.0  ;;  %v479_v34 = vsel %vm460_vm0, %v453_v22, 0.0  ;;  %v487_v43 = vadd.f32 %v446_v35, %v438_v45 }
  0xb8   :  { %v471_v21 = vadd.f32 %v470_v33, %v469_v0  ;;  %v480_v44 = vadd.f32 %v479_v34, %v478_v5  ;;  %v488_v46 = vsel %vm460_vm0, %v454_v26, 0.0  ;;  %v496_v47 = vadd.f32 %v447_v53, %v439_v49 }
  0xb9   :  { %v463_v48 = vrot.slane %v462_v32, 4  ;;  %v489_v50 = vadd.f32 %v488_v46, %v487_v43  ;;  %v497_v51 = vsel %vm460_vm0, %v455_v27, 0.0  ;;  %v505_v38 = vadd.f32 %v448_v37, %v440_v52 }
  0xba   :  { %v472_v54 = vrot.slane %v471_v21, 4  ;;  %v481_v55 = vrot.slane %v480_v44, 4  ;;  %v498_v23 = vadd.f32 %v497_v51, %v496_v47  ;;  %v506_v24 = vsel %vm460_vm0, %v456_v28, 0.0 }
  0xbb   :  { %v464_v25 = vadd.f32 %v463_v48, %v462_v32  ;;  %v490_v42 = vrot.slane %v489_v50, 4  ;;  %v507_v57 = vadd.f32 %v506_v24, %v505_v38  ;;  %v514_v58 = vadd.f32 %v449_v40, %v441_v39 }
  0xbc   :  { %v473_v45 = vadd.f32 %v472_v54, %v471_v21  ;;  %v482_v35 = vadd.f32 %v481_v55, %v480_v44  ;;  %v499_v59 = vrot.slane %v498_v23, 4  ;;  %v515_v60 = vsel %vm460_vm0, %v457_v29, 0.0 }
  0xbd   :  { %v491_v49 = vadd.f32 %v490_v42, %v489_v50  ;;  %v508_v53 = vrot.slane %v507_v57, 4  ;;  %v516_v61 = vadd.f32 %v515_v60, %v514_v58  ;;  %v523_v52 = vadd.f32 %v450_v56, %v442_v41 }
  0xbe   :  { %v500_v37 = vadd.f32 %v499_v59, %v498_v23  ;;  %v524_v62 = vsel %vm460_vm0, %v458_v30, 0.0  ;;  %v465_v63 = vrot.slane %v464_v25, 2  ;;  %v474_v0 = vrot.slane %v473_v45, 2 }
  0xbf   :  { %v509_v1 = vadd.f32 %v508_v53, %v507_v57  ;;  %v517_v39 = vrot.slane %v516_v61, 4  ;;  %v525_v40 = vadd.f32 %v524_v62, %v523_v52  ;;  %v483_v2 = vrot.slane %v482_v35, 2 }
  0xc0   :  { %v466_v3 = vadd.f32 %v465_v63, %v464_v25  ;;  %v475_v4 = vadd.f32 %v474_v0, %v473_v45  ;;  %v492_v5 = vrot.slane %v491_v49, 2  ;;  %v501_v6 = vrot.slane %v500_v37, 2 }
  0xc1   :  { %v518_v7 = vadd.f32 %v517_v39, %v516_v61  ;;  %v526_v8 = vrot.slane %v525_v40, 4  ;;  %v484_v9 = vadd.f32 %v483_v2, %v482_v35  ;;  %v510_v10 = vrot.slane %v509_v1, 2 }
  0xc2   :  { %v467_v11 = vrot.slane %v466_v3, 1  ;;  %v476_v36 = vrot.slane %v475_v4, 1  ;;  %v493_v41 = vadd.f32 %v492_v5, %v491_v49  ;;  %v502_v56 = vadd.f32 %v501_v6, %v500_v37 }
  0xc3   :  { %v527_v12 = vadd.f32 %v526_v8, %v525_v40  ;;  %v485_v13 = vrot.slane %v484_v9, 1  ;;  %v511_v15 = vadd.f32 %v510_v10, %v509_v1  ;;  %v519_v16 = vrot.slane %v518_v7, 2 }
  0xc4   :  { %v468_v17 = vadd.f32 %v467_v11, %v466_v3  ;;  %v477_v18 = vadd.f32 %v476_v36, %v475_v4  ;;  %v494_v19 = vrot.slane %v493_v41, 1  ;;  %v503_v22 = vrot.slane %v502_v56, 1 }
  0xc5   :  { %v486_v26 = vadd.f32 %v485_v13, %v484_v9  ;;  %v512_v27 = vrot.slane %v511_v15, 1  ;;  %v520_v28 = vadd.f32 %v519_v16, %v518_v7  ;;  %v528_v29 = vrot.slane %v527_v12, 2 }
  0xc6   :  { %v495_v30 = vadd.f32 %v494_v19, %v493_v41  ;;  %v504_v31 = vadd.f32 %v503_v22, %v502_v56  ;;  %v542_v32 = vadd.f32 %v919_v14, %v468_v17  ;;  %v543_v33 = vadd.f32 %v919_v14, %v477_v18 }
  0xc7   :  { %v513_v34 = vadd.f32 %v512_v27, %v511_v15  ;;  %v521_v43 = vrot.slane %v520_v28, 1  ;;  %v529_v21 = vadd.f32 %v528_v29, %v527_v12  ;;  %v544_v44 = vadd.f32 %v919_v14, %v486_v26 }
  0xc8   :  { %v545_v46 = vadd.f32 %v919_v14, %v495_v30  ;;  %v546_v47 = vadd.f32 %v919_v14, %v504_v31  ;;  %v550_v48 = vmul.f32 0.5, %v542_v32  ;;  %v551_v50 = vmul.f32 0.5, %v543_v33 }
  0xc9   :  { %v522_v51 = vadd.f32 %v521_v43, %v520_v28  ;;  %v530_v38 = vrot.slane %v529_v21, 1  ;;  %v547_v54 = vadd.f32 %v919_v14, %v513_v34  ;;  %v552_v55 = vmul.f32 0.5, %v544_v44 }
  0xca   :  { %v553_v23 = vmul.f32 0.5, %v545_v46  ;;  %v554_v24 = vmul.f32 0.5, %v546_v47  ;;  %698 = vtanh.f32 %v550_v48  ;;  %v740_v59 = vmov 1966171168  }
  0xcb   :  { %v531_v25 = vadd.f32 %v530_v38, %v529_v21  ;;  %v548_v42 = vadd.f32 %v919_v14, %v522_v51  ;;  %v555_v57 = vmul.f32 0.5, %v547_v54  ;;  %700 = vtanh.f32 %v551_v50 }
  0xcc   :  { %702 = vtanh.f32 %v552_v55  ;;  %v595_v60 = vunpack.c.l.s4 %v740_v59 }
  0xcd   :  { %v549_v58 = vadd.f32 %v919_v14, %v531_v25  ;;  %v556_v45 = vmul.f32 0.5, %v548_v42  ;;  %704 = vtanh.f32 %v553_v23 }
  0xce   :  { %706 = vtanh.f32 %v554_v24  ;;  %v596_v53 = vunpack.c.0.s8 %v595_v60 }
  0xcf   :  { %v557_v35 = vmul.f32 0.5, %v549_v58  ;;  %708 = vtanh.f32 %v555_v57 }
  0xd0   :  { %710 = vtanh.f32 %v556_v45  ;;  %v599_v2 = vsub.s32 %v596_v53, %v802_v20 }
  0xd1   :  { %712 = vtanh.f32 %v557_v35 }
  0xd4   :  { %v699_v49 = vpop.eup %698 }
  0xd5   :  { %v701_v61 = vpop.eup %700  ;;  %v566_v52 = vadd.f32 1.0, %v699_v49 }
  0xd6   :  { %v703_v37 = vpop.eup %702  ;;  %v567_v62 = vadd.f32 1.0, %v701_v61 }
  0xd7   :  { %v705_v63 = vpop.eup %704  ;;  %v568_v0 = vadd.f32 1.0, %v703_v37  ;;  %v574_v1 = vmul.f32 0.5, %v566_v52 }
  0xd8   :  { %v707_v39 = vpop.eup %706  ;;  %v569_v14 = vadd.f32 1.0, %v705_v63  ;;  %v575_v40 = vmul.f32 0.5, %v567_v62 }
  0xd9   :  { %v709_v3 = vpop.eup %708  ;;  %v570_v4 = vadd.f32 1.0, %v707_v39  ;;  %v576_v5 = vmul.f32 0.5, %v568_v0 }
  0xda   :  { %v711_v6 = vpop.eup %710  ;;  %v571_v7 = vadd.f32 1.0, %v709_v3  ;;  %v577_v8 = vmul.f32 0.5, %v569_v14  ;;  %v590_v9 = vcombine.low %v574_v1, %v575_v40 }
  0xdb   :  { %v713_v10 = vpop.eup %712  ;;  %v572_v11 = vadd.f32 1.0, %v711_v6  ;;  %v578_v36 = vmul.f32 0.5, %v570_v4 }
  0xdc   :  { %v573_v41 = vadd.f32 1.0, %v713_v10  ;;  %v579_v56 = vmul.f32 0.5, %v571_v7  ;;  %v591_v12 = vcombine.low %v576_v5, %v577_v8  ;;  %v600_v13 = vrot.slane %v590_v9, %v599_v2 }
  0xdd   :  { %v580_v15 = vmul.f32 0.5, %v572_v11 }
  0xde   :  { %v581_v16 = vmul.f32 0.5, %v573_v41  ;;  %v592_v17 = vcombine.low %v578_v36, %v579_v56  ;;  %v607_v18 = vrot.slane %v591_v12, %v599_v2 }
  0xe0   :  { %v593_v19 = vcombine.low %v580_v15, %v581_v16  ;;  %v614_v20 = vrot.slane %v592_v17, %v599_v2  ;;  %v622_v22 = vcombine.low %v600_v13, %v607_v18 }
  0xe2   :  { %v621_v26 = vrot.slane %v593_v19, %v599_v2  ;;  %v630_v28 = vrot.slane %v622_v22, %v599_v2 }
  0xe4   :  { %v623_v27 = vcombine.low %v614_v20, %v621_v26 }
  0xe6   :  { %v637_v29 = vrot.slane %v623_v27, %v599_v2 }
  0xe8   :  { %v638_v30 = vcombine.low %v630_v28, %v637_v29 }
  0xea   :  { %640 = vst [vmem:[#allocation3] sm:$0xff] %v638_v30 }
  0xeb   :  { %725 = shalt.err (!%p722_p4)
}
  0xec   :  { %s726_s17 = scalar_lea.hbm %s979_s5, 128 }
  0xed   :  { %p727_p5 = scmp.ne.s32.totalorder %s979_s5, %s726_s17  ;;  %p730_p6 = scmp.lt.u32.totalorder %s726_s17, %s979_s5 }
  0xef   :  { %p732_p7 = pnand %p730_p6, %p727_p5 }
  0xf1   :  { %735 = shalt.err (!%p732_p7)
}
  0xf2   :  { %650 = dma.vmem_to_hbm [thread:$0]  %s648_s13, 128, %s979_s5, [#allocation4]  }
  0xf3   :  { %736 = dma.done.wait [#allocation4], 128  }
  0xf4   :  { %737 = vsyncadd [#allocation4], 4294967168 }
  0xf5   :  { %654 = vsyncpa [#allocation4], 1 }

</bundles_post_ra>
